<compile_context>
chip_gen: v6e
topology: v6e:2x2x1
jax: 0.10.0
libtpu: 0.0.40
codegen_flags: <defaults>
</compile_context>

<pallas_src>
import jax
import jax.numpy as jnp
from jax.experimental import pallas as pl
from jax.experimental.pallas import tpu as pltpu


_LANES = 1024            # lane-dense last dim (multiple of 128 -> unmasked full-width vst)
_MAX_TILE_R = 1024       # 1024 x 1024 f32 = 4 MiB per block
_TARGET_GRID_STEPS = 4   # keep >= 2 (ideally 4+) grid steps so v7x's 2 TCs both stream


def _round_up(a, m):
    return -(-a // m) * m


def _affine_kernel(w_ref, b_ref, x_ref, o_ref):
    # w_ref / b_ref: (1,) scalars in SMEM. x_ref / o_ref: (tile_r, _LANES) VMEM tiles.
    o_ref[...] = x_ref[...] * w_ref[0] + b_ref[0]


def _bulk_pallas(x2d, w_scalar, b_scalar):
    """Streams a lane-dense (rows, _LANES) slab through the affine kernel."""
    rows, lanes = x2d.shape
    dtype = x2d.dtype

    if rows < 8:
        # Block equal to the full (sub-8) row extent is always a legal block shape.
        tile_r = rows
    else:
        # Aim for ~_TARGET_GRID_STEPS grid steps (sublane-aligned), capped at 4 MiB blocks.
        tile_r = min(_MAX_TILE_R, max(8, _round_up(-(-rows // _TARGET_GRID_STEPS), 8)))
    grid = (-(-rows // tile_r),)          # partial edge block is masked by Pallas
    itemsize = jnp.dtype(dtype).itemsize

    return pl.pallas_call(
        _affine_kernel,
        out_shape=jax.ShapeDtypeStruct((rows, lanes), dtype),
        grid_spec=pl.GridSpec(
            grid=grid,
            in_specs=[
                pl.BlockSpec(memory_space=pltpu.SMEM),                # weight scalar
                pl.BlockSpec(memory_space=pltpu.SMEM),                # bias scalar
                pl.BlockSpec((tile_r, lanes), lambda i: (i, 0)),      # x tile
            ],
            out_specs=pl.BlockSpec((tile_r, lanes), lambda i: (i, 0)),
        ),
        compiler_params=pltpu.CompilerParams(
            dimension_semantics=("parallel",),        # split rows across v7x's 2 TCs
            vmem_limit_bytes=32 << 20,                # 16 MiB footprint safe on v5e too
        ),
        cost_estimate=pl.CostEstimate(
            flops=2 * rows * lanes,
            transcendentals=0,
            bytes_accessed=2 * rows * lanes * itemsize,   # actual read + write traffic
        ),
    )(w_scalar, b_scalar, x2d)


def linear_1x1(x, weight, bias):
    """Pallas TPU implementation of nn.Linear(1, 1) applied to x of shape (N, 1)."""
    n, f = x.shape
    assert f == 1, "in_features must be 1"
    dtype = x.dtype

    w_scalar = weight.reshape(1).astype(dtype)   # (out=1, in=1) -> (1,)
    b_scalar = bias.reshape(1).astype(dtype)     # (1,)

    x_flat = x.reshape(-1)                       # (N, 1) -> (N,): bitcast, zero copy
    rows_bulk = n // _LANES
    bulk = rows_bulk * _LANES

    pieces = []
    if rows_bulk > 0:
        # Zero-copy reshape when N % 1024 == 0; otherwise only the bulk prefix moves.
        x2d = x_flat[:bulk].reshape(rows_bulk, _LANES)
        y2d = _bulk_pallas(x2d, w_scalar, b_scalar)
        pieces.append(y2d.reshape(-1))
    if bulk < n:
        # <1024 leftover elements: a trivial XLA epilogue beats any extra padding /
        # extra HBM pass through the kernel.
        pieces.append(x_flat[bulk:] * w_scalar[0] + b_scalar[0])

    y_flat = pieces[0] if len(pieces) == 1 else jnp.concatenate(pieces)
    return y_flat.reshape(n, 1)


if __name__ == "__main__":
    key = jax.random.PRNGKey(0)
    kx, kw, kb, kx2, kx3 = jax.random.split(key, 5)

    # nn.Linear(1, 1): weight (1, 1), bias (1,), init uniform(-1, 1) (1/sqrt(in)=1).
    weight = jax.random.uniform(kw, (1, 1), jnp.float32, minval=-1.0, maxval=1.0)
    bias = jax.random.uniform(kb, (1,), jnp.float32, minval=-1.0, maxval=1.0)

    def ref(v):
        return v @ weight.T + bias

    # 1) Natural small (batch=8, in_features=1) case: tail-only XLA epilogue path.
    x = jax.random.normal(kx, (8, 1), jnp.float32)
    y = linear_1x1(x, weight, bias)
    jax.block_until_ready(y)
    assert y.shape == (8, 1), y.shape
    assert jnp.allclose(y, ref(x), atol=1e-6)

    # 2) Exact multiple of 1024: fully zero-copy bulk path through the Pallas kernel.
    x2 = jax.random.normal(kx2, (8192, 1), jnp.float32)
    y2 = linear_1x1(x2, weight, bias)
    jax.block_until_ready(y2)
    assert jnp.allclose(y2, ref(x2), atol=1e-6)

    # 3) Ragged size: multi-step grid (4 steps, partial tiling) + <1024-element tail.
    x3 = jax.random.normal(kx3, (66_049, 1), jnp.float32)
    y3 = linear_1x1(x3, weight, bias)
    jax.block_until_ready(y3)
    assert jnp.allclose(y3, ref(x3), atol=1e-6)

    print("KERNEL_OK")
</pallas_src>

<mosaic_0001>
module attributes {stable_mosaic.version = 11 : i64} {
  func.func @_affine_kernel(%arg0: i32, %arg1: memref<1xf32, #tpu.memory_space<smem>>, %arg2: memref<1xf32, #tpu.memory_space<smem>>, %arg3: memref<8x1024xf32, #tpu.memory_space<vmem>>, %arg4: memref<8x1024xf32, #tpu.memory_space<vmem>>) attributes {dimension_semantics = [#tpu.dimension_semantics<parallel>], iteration_bounds = array<i64: 1>, scalar_prefetch = 0 : i64, scratch_operands = 0 : i64, tpu.core_type = #tpu.core_type<tc>, window_params = [{transform_indices = @transform_0, window_bounds = array<i64: 1>}, {transform_indices = @transform_1, window_bounds = array<i64: 1>}, {transform_indices = @transform_2, window_bounds = array<i64: 8, 1024>}, {transform_indices = @transform_3, window_bounds = array<i64: 8, 1024>}]} {
    %c0 = arith.constant 0 : index
    %c0_0 = arith.constant 0 : index
    %0 = vector.load %arg3[%c0, %c0_0] : memref<8x1024xf32, #tpu.memory_space<vmem>>, vector<8x1024xf32>
    %c0_1 = arith.constant 0 : index
    %1 = memref.load %arg1[%c0_1] : memref<1xf32, #tpu.memory_space<smem>>
    %2 = vector.broadcast %1 : f32 to vector<8x1024xf32>
    %3 = arith.mulf %0, %2 : vector<8x1024xf32>
    %c0_2 = arith.constant 0 : index
    %4 = memref.load %arg2[%c0_2] : memref<1xf32, #tpu.memory_space<smem>>
    %5 = vector.broadcast %4 : f32 to vector<8x1024xf32>
    %6 = arith.addf %3, %5 : vector<8x1024xf32>
    %c0_3 = arith.constant 0 : index
    %c0_4 = arith.constant 0 : index
    %7 = vector.load %arg4[%c0_3, %c0_4] : memref<8x1024xf32, #tpu.memory_space<vmem>>, vector<8x1024xf32>
    tpu.vector_store %arg4[%c0_3, %c0_4], %6 {strides = array<i32>} : memref<8x1024xf32, #tpu.memory_space<vmem>>, vector<8x1024xf32>,
    return
  }
  func.func @transform_0(%arg0: i32) -> i32 {
    %c0_i32 = arith.constant 0 : i32
    %c0_i32_0 = arith.constant 0 : i32
    return %c0_i32 : i32
  }
  func.func @transform_1(%arg0: i32) -> i32 {
    %c0_i32 = arith.constant 0 : i32
    %c0_i32_0 = arith.constant 0 : i32
    return %c0_i32 : i32
  }
  func.func @transform_2(%arg0: i32) -> (i32, i32) {
    %c0_i32 = arith.constant 0 : i32
    %c0_i32_0 = arith.constant 0 : i32
    return %arg0, %c0_i32 : i32, i32
  }
  func.func @transform_3(%arg0: i32) -> (i32, i32) {
    %c0_i32 = arith.constant 0 : i32
    %c0_i32_0 = arith.constant 0 : i32
    return %arg0, %c0_i32 : i32, i32
  }
}

</mosaic_0001>

<bundles_post_ra>
// kernel: tpu_custom_call.1
= control target key start
LH: loop header
LB: loop body
LE: loop exit
PB: predicated region body
PF: predicated region fallthrough
CT: control target
= control target key end

     0   :  { %10 = vsyncpa [#allocation5], 0  ;;  %s160_s0 = inlined_call_operand.<no memory space> [shape: f32[1], index: 0, kind: input, shape index: {}]   ;;  %s161_s1 = inlined_call_operand.<no memory space> [shape: f32[1], index: 1, kind: input, shape index: {}]   ;;  %s162_s2 = inlined_call_operand.hbm [shape: f32[8,1024], index: 2, kind: input, shape index: {}]   ;;  %s163_s3 = inlined_call_operand.hbm [shape: f32[8,1024], index: 3, kind: output, shape index: {}]  }
   0x1   :  { %11 = vsyncpa [#allocation6], 0  ;;  %s126_s12 = smov [#allocation4]  }
   0x2   :  { %s22_s13 = sshll.u32 %s126_s12, 4  ;;  %s23_s13 = int_to_ptr.vmem [resolvable:$true] %s22_s13 }
   0x3   :  { %s90_s14 = scalar_lea.vmem %s23_s13, 1024  ;;  %p95_p1 = scmp.lt.s32.totalorder %s23_s13, %s23_s13 }
   0x4   :  { %p91_p0 = scmp.ne.s32.totalorder %s23_s13, %s90_s14  ;;  %p96_p2 = scmp.lt.s32.totalorder %s90_s14, %s90_s14 }
   0x6   :  { %p97_p3 = por %p96_p2, %p95_p1 }
   0x8   :  { %p98_p4 = pnand %p97_p3, %p91_p0 }
   0xa   :  { %101 = shalt.err (!%p98_p4)
}
   0xb   :  { %25 = dma.hbm_to_vmem [thread:$0]  %s162_s2, 1024, %s23_s13, [#allocation5]  }
   0xc   :  { %122 = dma.done.wait [#allocation5], 1024  }
   0xd   :  { %123 = vsyncadd [#allocation5], 4294966272  ;;  %v38_v0 = vstv %s160_s0  ;;  %v29_v1 = vld [vmem:[#allocation4] sm:$0xff]  ;;  %v48_v2 = vstv %s161_s1  ;;  %v30_v3 = vld [vmem:[#allocation4 + $0x8] sm:$0xff]  ;;  %s127_s0 = smov [#allocation7]  }
   0xe   :  { %v31_v4 = vld [vmem:[#allocation4 + $0x10] sm:$0xff]  ;;  %v39_v5 = vmul.f32 %v38_v0, %v29_v1  ;;  %v40_v6 = vmul.f32 %v38_v0, %v30_v3  ;;  %v32_v8 = vld [vmem:[#allocation4 + $0x18] sm:$0xff]  ;;  %v33_v9 = vld [vmem:[#allocation4 + $0x20] sm:$0xff]  ;;  %s71_s2 = sshll.u32 %s127_s0, 4  ;;  %s72_s2 = int_to_ptr.vmem [resolvable:$true] %s71_s2 }
   0xf   :  { %v41_v7 = vmul.f32 %v38_v0, %v31_v4  ;;  %v34_v10 = vld [vmem:[#allocation4 + $0x28] sm:$0xff]  ;;  %v42_v11 = vmul.f32 %v38_v0, %v32_v8  ;;  %v43_v12 = vmul.f32 %v38_v0, %v33_v9  ;;  %v35_v14 = vld [vmem:[#allocation4 + $0x30] sm:$0xff]  ;;  %v36_v15 = vld [vmem:[#allocation4 + $0x38] sm:$0xff]  ;;  %s102_s1 = scalar_lea.vmem %s72_s2, 1024  ;;  %p107_p6 = scmp.lt.s32.totalorder %s72_s2, %s72_s2 }
  0x10   :  { %v44_v13 = vmul.f32 %v38_v0, %v34_v10  ;;  %v49_v16 = vadd.f32 %v48_v2, %v39_v5  ;;  %v50_v17 = vadd.f32 %v48_v2, %v40_v6  ;;  %v45_v19 = vmul.f32 %v38_v0, %v35_v14  ;;  %p103_p5 = scmp.ne.s32.totalorder %s72_s2, %s102_s1  ;;  %p108_p7 = scmp.lt.s32.totalorder %s102_s1, %s102_s1 }
  0x11   :  { %v51_v18 = vadd.f32 %v48_v2, %v41_v7  ;;  %v52_v20 = vadd.f32 %v48_v2, %v42_v11  ;;  %v53_v21 = vadd.f32 %v48_v2, %v43_v12  ;;  %v46_v23 = vmul.f32 %v38_v0, %v36_v15 }
  0x12   :  { %v54_v22 = vadd.f32 %v48_v2, %v44_v13  ;;  %57 = vst [vmem:[#allocation7] sm:$0xff] %v49_v16  ;;  %58 = vst [vmem:[#allocation7 + $0x8] sm:$0xff] %v50_v17  ;;  %v55_v24 = vadd.f32 %v48_v2, %v45_v19  ;;  %p109_p8 = por %p108_p7, %p107_p6 }
  0x13   :  { %59 = vst [vmem:[#allocation7 + $0x10] sm:$0xff] %v51_v18  ;;  %60 = vst [vmem:[#allocation7 + $0x18] sm:$0xff] %v52_v20  ;;  %v56_v25 = vadd.f32 %v48_v2, %v46_v23 }
  0x14   :  { %61 = vst [vmem:[#allocation7 + $0x20] sm:$0xff] %v53_v21  ;;  %62 = vst [vmem:[#allocation7 + $0x28] sm:$0xff] %v54_v22  ;;  %p110_p9 = pnand %p109_p8, %p103_p5 }
  0x15   :  { %63 = vst [vmem:[#allocation7 + $0x30] sm:$0xff] %v55_v24  ;;  %64 = vst [vmem:[#allocation7 + $0x38] sm:$0xff] %v56_v25 }
  0x16   :  { %113 = shalt.err (!%p110_p9)
}
  0x17   :  { %74 = dma.vmem_to_hbm [thread:$0]  %s72_s2, 1024, %s163_s3, [#allocation6]  }
  0x18   :  { %124 = dma.done.wait [#allocation6], 1024  }
  0x19   :  { %125 = vsyncadd [#allocation6], 4294966272 }
  0x1a   :  { %78 = vsyncpa [#allocation5], 1 }
  0x1b   :  { %79 = vsyncpa [#allocation6], 1 }

</bundles_post_ra>
